<compile_context>
chip_gen: v6e
topology: v6e:2x2x1
jax: 0.10.0
libtpu: 0.0.40
codegen_flags: <defaults>
</compile_context>

<pallas_src>
import functools
import math

import jax
import jax.numpy as jnp
from jax import lax
from jax.experimental import pallas as pl
from jax.experimental.pallas import tpu as pltpu

LN_EPS = 1e-5                     # torch.nn.LayerNorm default
MAX_ROW_TILE = 2048


def _tpu_vmem_bytes():
    """Physical VMEM per TensorCore, with a conservative fallback."""
    try:
        info = pltpu.get_tpu_info()
        cap = getattr(info, "vmem_capacity_bytes", None)
        if cap:
            return int(cap)
    except Exception:
        pass
    return 64 * 1024 * 1024       # v7x per-TC size: safe lower bound


_VMEM_PHYS = _tpu_vmem_bytes()
# Scoped request: 3/4 of physical, capped; leaves headroom for the compiler.
VMEM_LIMIT_BYTES = min((_VMEM_PHYS * 3) // 4, 96 * 1024 * 1024)
# Target resident bytes for streamed tiles + resident weights.
VMEM_TILE_BUDGET = (VMEM_LIMIT_BYTES * 3) // 5


def _cparams(n_grid_axes=1):
    return pltpu.CompilerParams(
        dimension_semantics=("parallel",) * n_grid_axes,
        vmem_limit_bytes=VMEM_LIMIT_BYTES,
    )


def _pick_row_tile(rows, row_bytes, const_bytes=0):
    """Pick a row tile that nearly fills the VMEM budget.

    row_bytes:   double-buffered bytes streamed per row (inputs + outputs)
                 plus per-row on-chip intermediates.
    const_bytes: bytes of grid-invariant blocks (weights, biases, gamma/beta).
    """
    budget = max(VMEM_TILE_BUDGET - const_bytes, 8 * row_bytes)
    tile = min(rows, MAX_ROW_TILE, budget // max(row_bytes, 1))
    if tile >= rows:
        return rows                          # block == full dim is always legal
    if tile >= 256:
        return (int(tile) // 256) * 256      # MXU-pass-friendly M tiles
    return max(8, (int(tile) // 8) * 8)      # sublane alignment


# ---------------------------------------------------------------------------
# Kernels
# ---------------------------------------------------------------------------

def _posenc_kernel(x_ref, p_ref, o_ref, *, scale):
    """out = x * scale + P  (elementwise, row-local: partial blocks are safe)."""
    out = x_ref[0].astype(jnp.float32) * scale + p_ref[...].astype(jnp.float32)
    o_ref[0] = out.astype(o_ref.dtype)


def _mha_addnorm_kernel(x_ref, wqkv_ref, bqkv_ref, wo_ref, bo_ref,
                        g_ref, bt_ref, o_ref, *, num_heads, scale):
    """One batch element: LayerNorm(x + MultiHeadAttention(x) @ Wo + bo).

    Fuses: QKV projection (single (H, 3H) matmul), per-head softmax attention,
    W_o projection (accumulated per head: block-matmul, avoids an in-kernel
    concatenate), residual add, LayerNorm.
    """
    S, H = x_ref.shape[1], x_ref.shape[2]
    Dh = H // num_heads

    x_nat = x_ref[0]                               # (S, H), native dtype
    x = x_nat.astype(jnp.float32)

    # Fused QKV projection: one matmul with the wide (H, 3H) weight.
    qkv = jnp.dot(x_nat, wqkv_ref[...], preferred_element_type=jnp.float32)
    qkv = qkv + bqkv_ref[...].astype(jnp.float32)  # (S, 3H) f32
    wo = wo_ref[...].astype(jnp.float32)           # (H, H)

    z = jnp.zeros((S, H), jnp.float32)
    for h in range(num_heads):                     # static loop, heads are small
        q = qkv[:, h * Dh:(h + 1) * Dh] * scale
        k = qkv[:, H + h * Dh:H + (h + 1) * Dh]
        v = qkv[:, 2 * H + h * Dh:2 * H + (h + 1) * Dh]
        s = lax.dot_general(q, k, (((1,), (1,)), ((), ())),
                            preferred_element_type=jnp.float32)   # (S, S)
        m = jnp.max(s, axis=-1, keepdims=True)
        p = jnp.exp(s - m)
        denom = jnp.sum(p, axis=-1, keepdims=True)
        p = p * pl.reciprocal(denom, approx=True)  # EUP slot, frees VALU
        ctx = jnp.dot(p, v, preferred_element_type=jnp.float32)   # (S, Dh)
        # W_o projection of this head's slice; summing over heads == concat@Wo.
        z = z + jnp.dot(ctx, wo[h * Dh:(h + 1) * Dh, :],
                        preferred_element_type=jnp.float32)

    # AddNorm #1 fused into the epilogue.
    z = z + bo_ref[...].astype(jnp.float32) + x
    mean = jnp.mean(z, axis=-1, keepdims=True)
    c = z - mean
    var = jnp.mean(c * c, axis=-1, keepdims=True)
    out = c * lax.rsqrt(var + LN_EPS)              # rsqrt -> EUP
    out = out * g_ref[...].astype(jnp.float32) + bt_ref[...].astype(jnp.float32)
    o_ref[0] = out.astype(o_ref.dtype)


def _ffn_addnorm_kernel(y_ref, w1_ref, b1_ref, w2_ref, b2_ref,
                        g_ref, bt_ref, o_ref):
    """out = LayerNorm(y + relu(y@W1 + b1)@W2 + b2), intermediate kept on-chip.

    NOTE: trailing partial row blocks read garbage rows; every op here is
    strictly row-local (matmul rows, LayerNorm over the last axis), and Pallas
    discards the out-of-bounds output rows, so this is safe.  Do NOT add any
    cross-row reduction to this kernel.
    """
    y_nat = y_ref[...]
    y = y_nat.astype(jnp.float32)
    h = jnp.dot(y_nat, w1_ref[...], preferred_element_type=jnp.float32)
    h = jnp.maximum(h + b1_ref[...].astype(jnp.float32), 0.0)
    z = jnp.dot(h, w2_ref[...], preferred_element_type=jnp.float32)
    z = z + b2_ref[...].astype(jnp.float32) + y
    mean = jnp.mean(z, axis=-1, keepdims=True)
    c = z - mean
    var = jnp.mean(c * c, axis=-1, keepdims=True)
    out = c * lax.rsqrt(var + LN_EPS)
    out = out * g_ref[...].astype(jnp.float32) + bt_ref[...].astype(jnp.float32)
    o_ref[...] = out.astype(o_ref.dtype)


# ---------------------------------------------------------------------------
# Wrappers (pallas_call)
# ---------------------------------------------------------------------------

def positional_encode(x, pos_table, scale):
    """x: (B, S, H); pos_table: (max_len, H). Returns x*scale + P[:S]."""
    B, S, H = x.shape
    p = pos_table[:S]
    ts = _pick_row_tile(S, row_bytes=2 * 3 * H * 4)
    return pl.pallas_call(
        functools.partial(_posenc_kernel, scale=scale),
        out_shape=jax.ShapeDtypeStruct((B, S, H), x.dtype),
        grid=(B, pl.cdiv(S, ts)),
        in_specs=[
            pl.BlockSpec((1, ts, H), lambda b, s: (b, s, 0)),
            pl.BlockSpec((ts, H), lambda b, s: (s, 0)),
        ],
        out_specs=pl.BlockSpec((1, ts, H), lambda b, s: (b, s, 0)),
        compiler_params=_cparams(2),
    )(x, p)


def mha_addnorm(x, wqkv, bqkv, wo, bo, gamma, beta, num_heads):
    """Fused multi-head self-attention block + AddNorm, one grid step per batch."""
    B, S, H = x.shape
    scale = 1.0 / math.sqrt(H // num_heads)
    x_spec = pl.BlockSpec((1, S, H), lambda b: (b, 0, 0))

    def const(shape):
        return pl.BlockSpec(shape, lambda b: (0,) * len(shape))

    return pl.pallas_call(
        functools.partial(_mha_addnorm_kernel, num_heads=num_heads, scale=scale),
        out_shape=jax.ShapeDtypeStruct((B, S, H), x.dtype),
        grid=(B,),
        in_specs=[
            x_spec,
            const((H, 3 * H)),     # Wq|Wk|Wv concatenated
            const((1, 3 * H)),
            const((H, H)),         # Wo
            const((1, H)),
            const((1, H)),         # gamma
            const((1, H)),         # beta
        ],
        out_specs=x_spec,
        compiler_params=_cparams(1),
    )(x, wqkv, bqkv.reshape(1, -1), wo, bo.reshape(1, -1),
      gamma.reshape(1, -1), beta.reshape(1, -1))


def ffn_addnorm(y2, w1, b1, w2, b2, gamma, beta):
    """Fused PositionWiseFFN + AddNorm over flattened rows (B*S, H)."""
    rows, H = y2.shape
    F = w1.shape[1]
    itemsize = 4
    const_bytes = 2 * (H * F + F + F * H + 3 * H) * itemsize   # resident weights
    row_bytes = (2 * 2 * H + F) * itemsize                     # y + out streams + h scratch
    tile = _pick_row_tile(rows, row_bytes, const_bytes)

    def const(shape):
        return pl.BlockSpec(shape, lambda i: (0,) * len(shape))

    return pl.pallas_call(
        _ffn_addnorm_kernel,
        out_shape=jax.ShapeDtypeStruct((rows, H), y2.dtype),
        grid=(pl.cdiv(rows, tile),),          # no jnp.pad: OOB rows discarded
        in_specs=[
            pl.BlockSpec((tile, H), lambda i: (i, 0)),
            const((H, F)),
            const((1, F)),
            const((F, H)),
            const((1, H)),
            const((1, H)),
            const((1, H)),
        ],
        out_specs=pl.BlockSpec((tile, H), lambda i: (i, 0)),
        compiler_params=_cparams(1),
    )(y2, w1, b1.reshape(1, -1), w2, b2.reshape(1, -1),
      gamma.reshape(1, -1), beta.reshape(1, -1))


# ---------------------------------------------------------------------------
# TransformerEncoder forward (2 fused kernels per layer)
# ---------------------------------------------------------------------------

def transformer_encoder_forward(x, params, num_heads):
    B, S, H = x.shape
    rows = B * S
    x = positional_encode(x, params["pos_table"], math.sqrt(H))
    for blk in params["blocks"]:
        y = mha_addnorm(x, blk["Wqkv"], blk["bqkv"], blk["Wo"], blk["bo"],
                        blk["g1"], blk["beta1"], num_heads)
        x2 = ffn_addnorm(y.reshape(rows, H), blk["W1"], blk["b1"],
                         blk["W2"], blk["b2"], blk["g2"], blk["beta2"])
        x = x2.reshape(B, S, H)
    return x


# ---------------------------------------------------------------------------
# Parameters & pure-JAX reference
# ---------------------------------------------------------------------------

def init_params(key, num_hiddens, ffn_num_hiddens, num_layers,
                max_len=1000, dtype=jnp.float32):
    H = num_hiddens
    pos = jnp.arange(max_len, dtype=jnp.float32)[:, None]
    div = jnp.power(10000.0, jnp.arange(0, H, 2, dtype=jnp.float32) / H)
    ang = pos / div
    P = jnp.zeros((max_len, H), jnp.float32)
    P = P.at[:, 0::2].set(jnp.sin(ang))
    P = P.at[:, 1::2].set(jnp.cos(ang))

    def linear_init(k, fan_in, fan_out):
        kw, kb = jax.random.split(k)
        bound = 1.0 / math.sqrt(fan_in)
        w = jax.random.uniform(kw, (fan_in, fan_out), dtype, -bound, bound)
        b = jax.random.uniform(kb, (fan_out,), dtype, -bound, bound)
        return w, b

    blocks = []
    for _ in range(num_layers):
        key, k1, k2, k3, k4, k5, k6, k7 = jax.random.split(key, 8)
        Wq, bq = linear_init(k1, H, H)
        Wk, bk = linear_init(k2, H, H)
        Wv, bv = linear_init(k3, H, H)
        Wo, bo = linear_init(k4, H, H)
        W1, b1 = linear_init(k5, H, ffn_num_hiddens)
        W2, b2 = linear_init(k6, ffn_num_hiddens, H)
        kg1, kg2, kb1, kb2 = jax.random.split(k7, 4)
        blocks.append(dict(
            Wqkv=jnp.concatenate([Wq, Wk, Wv], axis=1),   # (H, 3H)
            bqkv=jnp.concatenate([bq, bk, bv], axis=0),   # (3H,)
            Wo=Wo, bo=bo, W1=W1, b1=b1, W2=W2, b2=b2,
            g1=1.0 + 0.1 * jax.random.normal(kg1, (H,), dtype),
            beta1=0.1 * jax.random.normal(kb1, (H,), dtype),
            g2=1.0 + 0.1 * jax.random.normal(kg2, (H,), dtype),
            beta2=0.1 * jax.random.normal(kb2, (H,), dtype),
        ))
    return dict(pos_table=P.astype(dtype), blocks=blocks)


def _ref_layer_norm(z, gamma, beta):
    mean = jnp.mean(z, axis=-1, keepdims=True)
    var = jnp.mean((z - mean) ** 2, axis=-1, keepdims=True)
    return (z - mean) / jnp.sqrt(var + LN_EPS) * gamma + beta


def ref_transformer_encoder(x, params, num_heads):
    hi = lax.Precision.HIGHEST
    B, S, H = x.shape
    Dh = H // num_heads
    x = x * math.sqrt(H) + params["pos_table"][:S][None]
    for blk in params["blocks"]:
        qkv = jnp.dot(x, blk["Wqkv"], precision=hi) + blk["bqkv"]
        q, k, v = qkv[..., :H], qkv[..., H:2 * H], qkv[..., 2 * H:]

        def split(t):
            return (t.reshape(B, S, num_heads, Dh).transpose(0, 2, 1, 3)
                     .reshape(B * num_heads, S, Dh))

        qh, kh, vh = split(q), split(k), split(v)
        scores = jnp.einsum("bqd,bkd->bqk", qh, kh, precision=hi) / math.sqrt(Dh)
        w = jax.nn.softmax(scores, axis=-1)
        ctx = jnp.einsum("bqk,bkd->bqd", w, vh, precision=hi)
        ctx = (ctx.reshape(B, num_heads, S, Dh).transpose(0, 2, 1, 3)
                  .reshape(B, S, H))
        att = jnp.dot(ctx, blk["Wo"], precision=hi) + blk["bo"]
        y = _ref_layer_norm(x + att, blk["g1"], blk["beta1"])
        h = jnp.maximum(jnp.dot(y, blk["W1"], precision=hi) + blk["b1"], 0.0)
        f = jnp.dot(h, blk["W2"], precision=hi) + blk["b2"]
        x = _ref_layer_norm(y + f, blk["g2"], blk["beta2"])
    return x


if __name__ == "__main__":
    B, S, H = 2, 8, 32
    num_heads, num_layers, ffn_num_hiddens = 4, 2, 64

    key = jax.random.PRNGKey(0)
    kx, kp = jax.random.split(key, 2)
    X = jax.random.normal(kx, (B, S, H), dtype=jnp.float32)
    params = init_params(kp, H, ffn_num_hiddens, num_layers)

    out = transformer_encoder_forward(X, params, num_heads)
    out = jax.block_until_ready(out)
    assert out.shape == (B, S, H)

    ref = ref_transformer_encoder(X, params, num_heads)
    # MXU f32 matmuls + EUP approx reciprocal in the softmax vs. HIGHEST-precision
    # reference: 5e-3 tolerance (eval-mode parity, values are LayerNorm-scaled).
    err = float(jnp.max(jnp.abs(out - ref)))
    assert jnp.allclose(out, ref, atol=5e-3, rtol=5e-3), f"encoder mismatch: {err}"

    print("KERNEL_OK")
</pallas_src>

<mosaic_0001>
module attributes {stable_mosaic.version = 11 : i64} {
  func.func @_posenc_kernel(%arg0: i32, %arg1: i32, %arg2: memref<1x8x32xf32, #tpu.memory_space<vmem>>, %arg3: memref<8x32xf32, #tpu.memory_space<vmem>>, %arg4: memref<1x8x32xf32, #tpu.memory_space<vmem>>) attributes {dimension_semantics = [#tpu.dimension_semantics<parallel>, #tpu.dimension_semantics<parallel>], iteration_bounds = array<i64: 2, 1>, scalar_prefetch = 0 : i64, scratch_operands = 0 : i64, tpu.core_type = #tpu.core_type<tc>, window_params = [{transform_indices = @transform_0, window_bounds = array<i64: 1, 8, 32>}, {transform_indices = @transform_1, window_bounds = array<i64: 8, 32>}, {transform_indices = @transform_2, window_bounds = array<i64: 1, 8, 32>}]} {
    %c0 = arith.constant 0 : index
    %c0_0 = arith.constant 0 : index
    %c0_1 = arith.constant 0 : index
    %0 = vector.load %arg2[%c0, %c0_0, %c0_1] : memref<1x8x32xf32, #tpu.memory_space<vmem>>, vector<1x8x32xf32>
    %1 = vector.shape_cast %0 : vector<1x8x32xf32> to vector<8x32xf32>
    %cst = arith.constant 5.65685415 : f32
    %2 = vector.broadcast %cst : f32 to vector<8x32xf32>
    %3 = arith.mulf %1, %2 : vector<8x32xf32>
    %c0_2 = arith.constant 0 : index
    %c0_3 = arith.constant 0 : index
    %4 = vector.load %arg3[%c0_2, %c0_3] : memref<8x32xf32, #tpu.memory_space<vmem>>, vector<8x32xf32>
    %5 = arith.addf %3, %4 : vector<8x32xf32>
    %c0_4 = arith.constant 0 : index
    %c0_5 = arith.constant 0 : index
    %c0_6 = arith.constant 0 : index
    %6 = vector.load %arg4[%c0_4, %c0_5, %c0_6] : memref<1x8x32xf32, #tpu.memory_space<vmem>>, vector<1x8x32xf32>
    %7 = vector.shape_cast %6 : vector<1x8x32xf32> to vector<8x32xf32>
    %8 = vector.shape_cast %5 : vector<8x32xf32> to vector<1x8x32xf32>
    tpu.vector_store %arg4[%c0_4, %c0_5, %c0_6], %8 {strides = array<i32>} : memref<1x8x32xf32, #tpu.memory_space<vmem>>, vector<1x8x32xf32>,
    return
  }
  func.func @transform_0(%arg0: i32, %arg1: i32) -> (i32, i32, i32) {
    %c0_i32 = arith.constant 0 : i32
    %c0_i32_0 = arith.constant 0 : i32
    return %arg0, %arg1, %c0_i32 : i32, i32, i32
  }
  func.func @transform_1(%arg0: i32, %arg1: i32) -> (i32, i32) {
    %c0_i32 = arith.constant 0 : i32
    %c0_i32_0 = arith.constant 0 : i32
    return %arg1, %c0_i32 : i32, i32
  }
  func.func @transform_2(%arg0: i32, %arg1: i32) -> (i32, i32, i32) {
    %c0_i32 = arith.constant 0 : i32
    %c0_i32_0 = arith.constant 0 : i32
    return %arg0, %arg1, %c0_i32 : i32, i32, i32
  }
}

</mosaic_0001>

<bundles_post_ra>
// kernel: tpu_custom_call.1
= control target key start
LH: loop header
LB: loop body
LE: loop exit
PB: predicated region body
PF: predicated region fallthrough
CT: control target
= control target key end

     0   :  { %7 = vsyncpa [#allocation3], 0  ;;  %s716_s0 = inlined_call_operand.hbm [shape: f32[2,8,32], index: 0, kind: input, shape index: {}]   ;;  %s717_s1 = inlined_call_operand.hbm [shape: f32[8,32], index: 1, kind: input, shape index: {}]   ;;  %s718_s2 = inlined_call_operand.hbm [shape: f32[2,8,32], index: 2, kind: output, shape index: {}]  }
   0x1   :  { %9 = vsyncpa [#allocation3 + $0x1], 0 }
   0x2   :  { %10 = vsyncpa [#allocation6], 0 }
   0x3   :  { %11 = vsyncpa [#allocation4], 0 }
   0x4   :  { %13 = vsyncpa [#allocation4 + $0x1], 0  ;;  %s555_s9 = smov 0   ;;  %s557_s10 = smov 0  }
   0x5   :  { %s559_s11 = smov 0   ;;  %s561_s12 = smov 0  }
   0x6   :  { %s563_s13 = smov 0   ;;  %s565_s14 = smov 0  }
   0x7 LB: > { %s309_s15 = sadd.s32 4294967295, %s535_s14   ;;  %s310_s16 = sadd.s32 4294967294, %s535_s14   ;;  %s535_s14 = sphi %s565_s14, %s19_s14   ;;  %s531_s13 = sphi %s563_s13, %s735_s13   ;;  %s527_s12 = sphi %s561_s12, %s734_s12   ;;  %s523_s11 = sphi %s559_s11, %s733_s11   ;;  %s519_s10 = sphi %s557_s10, %s732_s10   ;;  %s515_s9 = sphi %s555_s9, %s731_s9  }
   0x8   : > { %p53_p0 = scmp.ne.s32.totalorder %s519_s10, %s515_s9  ;;  %p589_p1 = scmp.eq.s32.totalorder %s309_s15, 0 }
   0x9   : > { %p593_p2 = scmp.eq.s32.totalorder %s309_s15, 1  ;;  %p111_p3 = scmp.eq.s32.totalorder %s310_s16, 1 }
   0xa   : > { %p599_p4 = por %p589_p1, %p53_p0  ;;  %p311_p5 = scmp.ge.s32.totalorder %s535_s14, 1 }
   0xb   : > { %p604_p6 = por %p111_p3, %p53_p0  ;;  %p118_p7 = scmp.lt.s32.totalorder %s535_s14, 3 }
   0xc   : > { %s722_s19 = scalar_select %p599_p4, 1, 0 }
   0xd   : > { %s723_s20 = scalar_select %p604_p6, 1, 0 }
   0xe   : > { %p609_p8 = pnand %p311_p5, %p118_p7  ;;  %s537_s22 = smov [#allocation5]  }
   0xf   : > { %s133_s23 = sshll.u32 %s537_s22, 4  ;;  %s31_s25 = sadd.s32 1, %s531_s13  ;;  %s134_s23 = int_to_ptr.vmem [resolvable:$true] %s133_s23 }
  0x10   : > { %p332_p10 = pneg %p609_p8  ;;  %s40_s26 = sadd.s32 1, %s523_s11 }
  0x11   : > { %p33_p12 = scmp.ge.s32.totalorder %s31_s25, 2  ;;  %s408_s27 = scalar_lea.vmem %s134_s23, 128 }
  0x12   : > { %p618_p11 = pnand %p332_p10, %p589_p1  ;;  %p409_p0 = scmp.ne.s32.totalorder %s134_s23, %s408_s27 }
  0x13   : > { %p416_p7 = scmp.lt.s32.totalorder %s134_s23, %s134_s23  ;;  %p417_p6 = scmp.lt.s32.totalorder %s408_s27, %s408_s27 }
  0x14   : > { %p399_p13 = pneg %p618_p11 }
  0x15   : > { %p418_p9 = por %p417_p6, %p416_p7 }
  0x16   : > { %p411_p3 = pnand %p409_p0, %p399_p13 }
  0x18   : > { %p412_p5 = pneg %p411_p3 }
  0x1a   : > { %p419_p4 = pnand %p418_p9, %p412_p5 }
  0x1c   : > { %422 = shalt.err (!%p419_p4)
}
  0x1d   : > { %335 = dma.hbm_to_vmem [thread:$0]  (!%p618_p11), %s717_s1, 128, %s134_s23, [#allocation6]  }
  0x1e   : > { %s737_s25 = smov (%p33_p12, %s31_s25), 0  ;;  %p47_p6 = scmp.ne.s32.totalorder %s523_s11, %s519_s10 }
  0x1f   : > { %p48_p4 = scmp.eq.s32.totalorder %s535_s14, 0  ;;  %s35_s30 = ssub.s32 %s531_s13, %s737_s25 }
  0x20   : > { %p345_p9 = scmp.lt.s32.totalorder %s535_s14, 2  ;;  %p38_p10 = scmp.eq.s32.totalorder %s35_s30, 0 }
  0x21   : > { %p49_p13 = por %p48_p4, %p47_p6  ;;  %p641_p0 = por %p593_p2, %p47_p6 }
  0x22   : > { %s144_s4 = sand.u32 1, %s523_s11   ;;  %s315_s7 = sshll.u32 %s531_s13, 7 }
  0x23   : > { %s647_s5 = scalar_select %p38_p10, %s523_s11, %s40_s26  }
  0x24   : > { %s314_s6 = sshll.u32 %s144_s4, 3  ;;  %s154_s16 = scalar_lea.hbm %s716_s0, %s315_s7 }
  0x25   : > { %s148_s22 = scalar_lea.vmem [#allocation2], %s314_s6  ;;  %p653_p11 = pnand %p345_p9, %p49_p13 }
  0x26   : > { %s156_s23 = sshll.u32 %s148_s22, 4  ;;  %s145_s18 = scalar_lea.sflag [#allocation3], %s144_s4  ;;  %s157_s23 = int_to_ptr.vmem [resolvable:$true] %s156_s23 }
  0x27   : > { %p425_p2 = pneg %p653_p11  ;;  %s436_s27 = scalar_lea.vmem %s157_s23, 128 }
  0x28   : > { %p437_p12 = scmp.ne.s32.totalorder %s157_s23, %s436_s27  ;;  %s538_s26 = smov [#allocation2]  }
  0x29   : > { %s441_s28 = sshll.u32 %s538_s26, 4  ;;  %s442_s28 = int_to_ptr.vmem [resolvable:$false] %s441_s28 }
  0x2a   : > { %p439_p3 = pnand %p437_p12, %p425_p2  ;;  %s443_s29 = scalar_lea.vmem %s442_s28, 256 }
  0x2b   : > { %p444_p7 = scmp.lt.s32.totalorder %s157_s23, %s442_s28  ;;  %p445_p6 = scmp.lt.s32.totalorder %s443_s29, %s436_s27 }
  0x2c   : > { %p440_p5 = pneg %p439_p3 }
  0x2d   : > { %p446_p4 = por %p445_p6, %p444_p7 }
  0x2f   : > { %p447_p10 = pnand %p446_p4, %p440_p5 }
  0x31   : > { %450 = shalt.err (!%p447_p10)
}
  0x32   : > { %339 = dma.hbm_to_vmem [thread:$0]  (!%p653_p11), %s154_s16, 128, %s157_s23, %s145_s18  }
  0x33   : > { %165 = sbr.rel (%p609_p8) target bundleno = 83 (0x53), region = 28  ;;  %s664_s30 = sand.u32 (!%p609_p8), 1, %s519_s10  }
  0x34   : > { %s317_s4 = sshll.u32 (!%p609_p8), %s664_s30, 3  ;;  %s168_s6 = scalar_lea.sflag (!%p609_p8), [#allocation3], %s664_s30 }
  0x35   : > { %s171_s7 = scalar_lea.vmem (!%p609_p8), [#allocation2], %s317_s4  ;;  %p728_p9 = scmp.ne.s32.totalorder (!%p609_p8), %s722_s19, 0 }
  0x38   : > { %502 = dma.done.wait (%p728_p9), %s168_s6, 128  }
  0x39   : > { %504 = vsyncadd (%p728_p9), %s168_s6, 4294967168 }
  0x3a   : > { %506 = dma.done.wait (%p589_p1), [#allocation6], 128  }
  0x3b   : > { %508 = vsyncadd (%p589_p1), [#allocation6], 4294967168  ;;  %v196_v0 = vld [vmem:[%s171_s7] sm:$0xff]  ;;  %v198_v1 = vld [vmem:[#allocation5] sm:$0xff]  ;;  %s195_s21 = scalar_lea.vmem [#allocation7], %s317_s4  ;;  %s321_s15 = sshll.u32 %s527_s12, 7 }
  0x3c   : > { %s217_s8 = sshll.u32 %s195_s21, 4  ;;  %v197_v2 = vmul.f32 5.656854, %v196_v0  ;;  %vm200_vm0 = vcmask 261120   ;;  %s215_s22 = scalar_lea.hbm %s718_s2, %s321_s15  ;;  %s218_s8 = int_to_ptr.vmem [resolvable:$true] %s217_s8 }
  0x3d   : > { %s203_s23 = scalar_lea.sflag [#allocation4], %s664_s30  ;;  %s451_s17 = scalar_lea.vmem %s218_s8, 128 }
  0x3e   : > { %v199_v3 = vadd.f32 %v198_v1, %v197_v2  ;;  %p452_p1 = scmp.ne.s32.totalorder %s218_s8, %s451_s17  ;;  %s539_s24 = smov [#allocation7]  }
  0x3f   : > { %s455_s18 = sshll.u32 %s539_s24, 4  ;;  %s456_s18 = int_to_ptr.vmem [resolvable:$false] %s455_s18 }
  0x40   : > { %201 = vst.msk [vmem:[%s195_s21] sm:$0xff] %vm200_vm0, %v199_v3  ;;  %p453_p8 = pnand %p452_p1, %p641_p0  ;;  %s457_s27 = scalar_lea.vmem %s456_s18, 256 }
  0x41   : > { %p458_p11 = scmp.lt.s32.totalorder %s218_s8, %s456_s18  ;;  %p459_p2 = scmp.lt.s32.totalorder %s457_s27, %s451_s17 }
  0x42   : > { %p454_p13 = pneg %p453_p8 }
  0x43   : > { %p460_p12 = por %p459_p2, %p458_p11 }
  0x45   : > { %p461_p3 = pnand %p460_p12, %p454_p13 }
  0x47   : > { %464 = shalt.err (!%p461_p3)
}
  0x48   : > { %s465_s12 = scalar_lea.hbm %s215_s22, 128  ;;  %s469_s29 = scalar_lea.hbm %s718_s2, 256 }
  0x49   : > { %p466_p5 = scmp.ne.s32.totalorder %s215_s22, %s465_s12  ;;  %p470_p4 = scmp.lt.s32.totalorder %s215_s22, %s718_s2 }
  0x4a   : > { %p471_p10 = scmp.lt.s32.totalorder %s469_s29, %s465_s12 }
  0x4b   : > { %p467_p7 = pnand %p466_p5, %p641_p0 }
  0x4c   : > { %p472_p9 = por %p471_p10, %p470_p4 }
  0x4d   : > { %p468_p6 = pneg %p467_p7 }
  0x4f   : > { %p473_p1 = pnand %p472_p9, %p468_p6 }
  0x51   : > { %476 = shalt.err (!%p473_p1)
}
  0x52   : > { %330 = dma.vmem_to_hbm [thread:$0]  (%p641_p0), %s218_s8, 128, %s215_s22, %s203_s23  }
  0x53 PF: > { %s229_s6 = sand.u32 1, %s515_s9   ;;  %p729_p8 = scmp.ne.s32.totalorder %s723_s20, 0 }
  0x54   : > { %p730_p13 = scmp.ge.s32.totalorder %s535_s14, 2  ;;  %s230_s7 = scalar_lea.sflag [#allocation4], %s229_s6 }
  0x56   : > { %p341_p11 = pnand %p730_p13, %p729_p8 }
  0x58   : > { %p342_p2 = pneg %p341_p11 }
  0x5a   : > { %510 = dma.done.wait (%p342_p2), %s230_s7, 128  }
  0x5b   : > { %512 = vsyncadd (%p342_p2), %s230_s7, 4294967168  ;;  %s19_s14 = sadd.s32 1, %s535_s14   ;;  %s731_s9 = smov %s519_s10 }
  0x5c   : > { %p16_p12 = scmp.ge.s32.totalorder %s19_s14, 4   ;;  %s732_s10 = smov %s523_s11 }
  0x5d   : > { %s733_s11 = smov %s647_s5  ;;  %s734_s12 = smov %s531_s13 }
  0x5e   : > { %s735_s13 = smov %s737_s25  ;;  %18 = sbr.rel (!%p16_p12) target bundleno = 7 (0x7), region = 78 }
  0x63   :  { %235 = vsyncpa [#allocation3], 1 }
  0x64   :  { %237 = vsyncpa [#allocation3 + $0x1], 1 }
  0x65   :  { %238 = vsyncpa [#allocation6], 1 }
  0x66   :  { %239 = vsyncpa [#allocation4], 1 }
  0x67   :  { %241 = vsyncpa [#allocation4 + $0x1], 1 }

</bundles_post_ra>
